<compile_context>
chip_gen: v7x
topology: tpu7x:2x2x1
jax: 0.10.0
libtpu: 0.0.40
codegen_flags: <defaults>
</compile_context>

<pallas_src>
import math

import jax
import jax.numpy as jnp
from jax import lax
from jax.experimental import pallas as pl
from jax.experimental.pallas import tpu as pltpu

LN_EPS = 1e-5  # PyTorch nn.LayerNorm default


def _layernorm(x, gamma, beta):
    # x: (T, D); gamma/beta: (1, D).  Biased variance over last axis (PyTorch).
    mean = jnp.mean(x, axis=-1, keepdims=True)
    xc = x - mean
    var = jnp.mean(xc * xc, axis=-1, keepdims=True)
    inv = lax.rsqrt(var + LN_EPS)
    return xc * inv * gamma + beta


def _gelu_exact(x):
    # PyTorch nn.GELU() default = exact erf formulation.
    return 0.5 * x * (1.0 + lax.erf(x * (1.0 / math.sqrt(2.0))))


def fnet_layer_kernel(
    x_ref,       # (S, H) f32   full sequence for this batch element
    css_ref,     # (TQ, 2S) f32 rows of [C_s | -S_s] for this seq tile
    chsh_ref,    # (H, 2H) f32  [C_h | S_h]
    vec_ref,     # (5, H) f32   rows: g1, b1, g2, b2, bw2
    bw1_ref,     # (1, F) f32   linear1 bias
    w1_ref,      # (H, F) bf16  linear1 weight
    w2_ref,      # (F, H) bf16  linear2 weight
    o_ref,       # (TQ, H) f32
    xcxs_ref,    # scratch (2S, H) f32: rows [0:S] = x@C_h, rows [S:2S] = x@S_h
):
    S, H = x_ref.shape
    TQ = o_ref.shape[0]
    q = pl.program_id(1)

    # ---- hidden-axis DFT, computed once per batch element (q == 0) ----
    @pl.when(q == 0)
    def _():
        # (S, H) @ (H, 2H) -> (S, 2H); kept in f32 for Fourier accuracy.
        xcs = jnp.dot(x_ref[...], chsh_ref[...],
                      preferred_element_type=jnp.float32)
        xcxs_ref[0:S, :] = xcs[:, 0:H]
        xcxs_ref[S:2 * S, :] = xcs[:, H:2 * H]

    # ---- seq-axis DFT for this tile of query rows (fused cos/sin) ----
    # (TQ, 2S) @ (2S, H) -> (TQ, H)  ==  C_s@xc - S_s@xs
    fourier = jnp.dot(css_ref[...], xcxs_ref[...],
                      preferred_element_type=jnp.float32)

    row0 = pl.multiple_of(q * TQ, TQ)
    x_tile = x_ref[pl.ds(row0, TQ), :]

    g1 = vec_ref[0:1, :]
    b1 = vec_ref[1:2, :]
    g2 = vec_ref[2:3, :]
    b2 = vec_ref[3:4, :]
    bw2 = vec_ref[4:5, :]

    # ---- Fourier sublayer residual + LayerNorm (f32) ----
    y1 = _layernorm(x_tile + fourier, g1, b1)

    # ---- FeedForward sublayer: bf16 MXU operands, f32 accumulation ----
    h = jnp.dot(y1.astype(jnp.bfloat16), w1_ref[...],
                preferred_element_type=jnp.float32) + bw1_ref[...]
    h = _gelu_exact(h)
    ff = jnp.dot(h.astype(jnp.bfloat16), w2_ref[...],
                 preferred_element_type=jnp.float32) + bw2
    # TODO(synk): dropout is identity here (inference semantics; no RNG mask).
    y2 = _layernorm(y1 + ff, g2, b2)

    o_ref[...] = y2.astype(o_ref.dtype)


def _choose_tq(S):
    # 256-aligned tiles for v6e/v7x MXU; 128 fallback; tiny S = single tile.
    if S % 256 == 0:
        return 256
    if S % 128 == 0:
        return 128
    return S


def _vmem_limit_bytes(S, H, F, TQ):
    f32, bf16, db = 4, 2, 2  # db = double buffering
    est = (
        db * S * H * f32                    # x block
        + db * TQ * 2 * S * f32             # css tile
        + db * H * 2 * H * f32              # chsh
        + db * 8 * max(H, 128) * f32        # packed (5,H) vectors, padded
        + db * 8 * max(F, 128) * f32        # bw1, padded
        + db * H * F * bf16                 # w1
        + db * F * H * bf16                 # w2
        + db * TQ * H * f32                 # output block
        + 2 * S * H * f32                   # xc/xs scratch
        + S * 2 * H * f32                   # xcs intermediate
        + 3 * TQ * H * f32                  # fourier / y1 / y2 temporaries
        + 2 * TQ * F * f32                  # h / gelu temporaries
    )
    est = int(est * 1.5) + (2 << 20)
    # Leave headroom under v7x's 64 MiB physical VMEM; v5e/v6e have 128 MiB.
    return min(max(est, 32 << 20), int(0.9 * (64 << 20)))


def _dft_matrices(S, H):
    """Fused real-DFT matrices: css = [C_s | -S_s] (S,2S), chsh = [C_h | S_h] (H,2H)."""
    def cos_sin(n):
        # (k*k') mod n in int32 before scaling: exact up to n ~ 46k (f32 outer
        # product would drift for n >~ 4096).
        k = jnp.arange(n, dtype=jnp.int32)
        prod = (k[:, None] * k[None, :]) % n
        ang = (2.0 * jnp.pi / n) * prod.astype(jnp.float32)
        return jnp.cos(ang), jnp.sin(ang)

    cs, ss = cos_sin(S)
    ch, sh = cos_sin(H)
    css = jnp.concatenate([cs, -ss], axis=1)    # (S, 2S)
    chsh = jnp.concatenate([ch, sh], axis=1)    # (H, 2H)
    return css, chsh


def fnet_layer(x, dft, params):
    """Apply one FNetLayer. x: (B, S, H) float32."""
    B, S, H = x.shape
    F = params["w1"].shape[1]
    css, chsh = dft
    TQ = _choose_tq(S)
    n_q = S // TQ

    # Pack the five (1, H) vectors into a single (5, H) input (fewer DMAs).
    vecs = jnp.concatenate(
        [params["g1"], params["b1"], params["g2"], params["b2"], params["bw2"]],
        axis=0)
    w1 = params["w1"].astype(jnp.bfloat16)
    w2 = params["w2"].astype(jnp.bfloat16)
    bw1 = params["bw1"]

    def full(shape):
        return pl.BlockSpec(shape, lambda b, q: (0,) * len(shape))

    grid_spec = pltpu.PrefetchScalarGridSpec(
        num_scalar_prefetch=0,
        grid=(B, n_q),
        in_specs=[
            pl.BlockSpec((None, S, H), lambda b, q: (b, 0, 0)),   # x (batch squeezed)
            pl.BlockSpec((TQ, 2 * S), lambda b, q: (q, 0)),       # css tile
            full((H, 2 * H)),                                     # chsh
            full((5, H)),                                         # packed vectors
            full((1, F)),                                         # bw1
            full((H, F)),                                         # w1 (bf16)
            full((F, H)),                                         # w2 (bf16)
        ],
        out_specs=pl.BlockSpec((None, TQ, H), lambda b, q: (b, q, 0)),
        scratch_shapes=[pltpu.VMEM((2 * S, H), jnp.float32)],
    )

    flops = 2 * B * (S * H * 2 * H + S * 2 * S * H + 2 * S * H * F)
    bytes_accessed = int(
        4 * (2 * x.size + css.size + chsh.size + vecs.size + bw1.size)
        + 2 * (w1.size + w2.size))
    cost = pl.CostEstimate(flops=flops, transcendentals=B * S * F,
                           bytes_accessed=bytes_accessed)

    return pl.pallas_call(
        fnet_layer_kernel,
        out_shape=jax.ShapeDtypeStruct((B, S, H), jnp.float32),
        grid_spec=grid_spec,
        compiler_params=pltpu.CompilerParams(
            dimension_semantics=("parallel", "arbitrary"),
            vmem_limit_bytes=_vmem_limit_bytes(S, H, F, TQ)),
        cost_estimate=cost,
    )(x, css, chsh, vecs, bw1, w1, w2)


def fnet_encoder(x, layer_params):
    B, S, H = x.shape
    dft = _dft_matrices(S, H)  # built once, shared by every layer
    for p in layer_params:
        x = fnet_layer(x, dft, p)
    return x


# ---------------- pure-JAX reference for validation ----------------
def _layernorm_np(x, gamma, beta):
    mean = jnp.mean(x, axis=-1, keepdims=True)
    var = jnp.mean((x - mean) ** 2, axis=-1, keepdims=True)
    return (x - mean) / jnp.sqrt(var + LN_EPS) * gamma + beta


def _ref_layer(x, p):
    f = jnp.fft.fft(jnp.fft.fft(x, axis=-1), axis=-2).real
    y1 = _layernorm_np(x + f, p["g1"], p["b1"])
    h = jax.nn.gelu(y1 @ p["w1"] + p["bw1"], approximate=False)
    ff = h @ p["w2"] + p["bw2"]
    return _layernorm_np(y1 + ff, p["g2"], p["b2"])


def _ref_encoder(x, layer_params):
    for p in layer_params:
        x = _ref_layer(x, p)
    return x


def init_params(key, num_layers, hidden, ffn):
    """Deterministic synthetic params (PyTorch Linear-style uniform init)."""
    params = []
    for _ in range(num_layers):
        key, k1, k2, k3, k4 = jax.random.split(key, 5)
        lim1 = 1.0 / math.sqrt(hidden)
        lim2 = 1.0 / math.sqrt(ffn)
        params.append({
            "g1": jnp.ones((1, hidden), jnp.float32),
            "b1": jnp.zeros((1, hidden), jnp.float32),
            "w1": jax.random.uniform(k1, (hidden, ffn), jnp.float32, -lim1, lim1),
            "bw1": jax.random.uniform(k2, (1, ffn), jnp.float32, -lim1, lim1),
            "w2": jax.random.uniform(k3, (ffn, hidden), jnp.float32, -lim2, lim2),
            "bw2": jax.random.uniform(k4, (1, hidden), jnp.float32, -lim2, lim2),
            "g2": jnp.ones((1, hidden), jnp.float32),
            "b2": jnp.zeros((1, hidden), jnp.float32),
        })
    return params


if __name__ == "__main__":
    B, S, H, FFN = 2, 8, 32, 64
    NUM_LAYERS = 2

    key = jax.random.PRNGKey(0)
    kx, kp = jax.random.split(key)
    x = jax.random.normal(kx, (B, S, H), jnp.float32)
    layer_params = init_params(kp, NUM_LAYERS, H, FFN)

    encoder = jax.jit(fnet_encoder)
    out = jax.block_until_ready(encoder(x, layer_params))

    ref = _ref_encoder(x, layer_params)
    assert out.shape == (B, S, H)
    # FF matmuls use bf16 MXU operands -> bf16-level tolerance vs f32/FFT ref.
    err = jnp.max(jnp.abs(out - ref))
    assert jnp.allclose(out, ref, atol=5e-2, rtol=5e-2), f"max abs err {err}"
    print("KERNEL_OK")
</pallas_src>

<mosaic_0001>
module attributes {stable_mosaic.version = 11 : i64} {
  func.func @fnet_layer_kernel(%arg0: i32, %arg1: i32, %arg2: memref<1x8x32xf32, #tpu.memory_space<vmem>>, %arg3: memref<8x16xf32, #tpu.memory_space<vmem>>, %arg4: memref<32x64xf32, #tpu.memory_space<vmem>>, %arg5: memref<5x32xf32, #tpu.memory_space<vmem>>, %arg6: memref<1x64xf32, #tpu.memory_space<vmem>>, %arg7: memref<32x64xbf16, #tpu.memory_space<vmem>>, %arg8: memref<64x32xbf16, #tpu.memory_space<vmem>>, %arg9: memref<1x8x32xf32, #tpu.memory_space<vmem>>, %arg10: memref<16x32xf32, #tpu.memory_space<vmem>>) attributes {dimension_semantics = [#tpu.dimension_semantics<parallel>, #tpu.dimension_semantics<arbitrary>], iteration_bounds = array<i64: 2, 1>, scalar_prefetch = 0 : i64, scratch_operands = 1 : i64, tpu.core_type = #tpu.core_type<tc>, window_params = [{transform_indices = @transform_0, window_bounds = array<i64: 1, 8, 32>}, {transform_indices = @transform_1, window_bounds = array<i64: 8, 16>}, {pipeline_mode = #tpu.pipeline_mode<synchronous>, transform_indices = @transform_2, window_bounds = array<i64: 32, 64>}, {pipeline_mode = #tpu.pipeline_mode<synchronous>, transform_indices = @transform_3, window_bounds = array<i64: 5, 32>}, {pipeline_mode = #tpu.pipeline_mode<synchronous>, transform_indices = @transform_4, window_bounds = array<i64: 1, 64>}, {pipeline_mode = #tpu.pipeline_mode<synchronous>, transform_indices = @transform_5, window_bounds = array<i64: 32, 64>}, {pipeline_mode = #tpu.pipeline_mode<synchronous>, transform_indices = @transform_6, window_bounds = array<i64: 64, 32>}, {transform_indices = @transform_7, window_bounds = array<i64: 1, 8, 32>}]} {
    %c0_i32 = arith.constant 0 : i32
    %0 = arith.cmpi eq, %arg1, %c0_i32 : i32
    %1 = arith.extui %0 : i1 to i32
    %c0_i32_0 = arith.constant 0 : i32
    %2 = arith.cmpi ne, %1, %c0_i32_0 : i32
    scf.if %2 {
      %c0_36 = arith.constant 0 : index
      %c0_37 = arith.constant 0 : index
      %c0_38 = arith.constant 0 : index
      %80 = vector.load %arg2[%c0_36, %c0_37, %c0_38] : memref<1x8x32xf32, #tpu.memory_space<vmem>>, vector<1x8x32xf32>
      %81 = vector.shape_cast %80 : vector<1x8x32xf32> to vector<8x32xf32>
      %c0_39 = arith.constant 0 : index
      %c0_40 = arith.constant 0 : index
      %82 = vector.load %arg4[%c0_39, %c0_40] : memref<32x64xf32, #tpu.memory_space<vmem>>, vector<32x64xf32>
      %cst_41 = arith.constant dense<0.000000e+00> : vector<8x64xf32>
      %83 = tpu.matmul %81, %82, %cst_41 {dimension_numbers = #tpu.dot_dimension_numbers<[1], [0], [0], [1], [0, 0, 1, 1], [], []>} : vector<8x32xf32>, vector<32x64xf32>, vector<8x64xf32> -> vector<8x64xf32>
      %84 = vector.extract_strided_slice %83 {offsets = [0, 0], sizes = [8, 32], strides = [1, 1]} : vector<8x64xf32> to vector<8x32xf32>
      %c0_42 = arith.constant 0 : index
      %c0_43 = arith.constant 0 : index
      %85 = vector.load %arg10[%c0_42, %c0_43] : memref<16x32xf32, #tpu.memory_space<vmem>>, vector<8x32xf32>
      tpu.vector_store %arg10[%c0_42, %c0_43], %84 {strides = array<i32>} : memref<16x32xf32, #tpu.memory_space<vmem>>, vector<8x32xf32>,
      %86 = vector.extract_strided_slice %83 {offsets = [0, 32], sizes = [8, 32], strides = [1, 1]} : vector<8x64xf32> to vector<8x32xf32>
      %c8 = arith.constant 8 : index
      %c0_44 = arith.constant 0 : index
      %87 = vector.load %arg10[%c8, %c0_44] : memref<16x32xf32, #tpu.memory_space<vmem>>, vector<8x32xf32>
      tpu.vector_store %arg10[%c8, %c0_44], %86 {strides = array<i32>} : memref<16x32xf32, #tpu.memory_space<vmem>>, vector<8x32xf32>,
    } else {
    }
    %c0 = arith.constant 0 : index
    %c0_1 = arith.constant 0 : index
    %3 = vector.load %arg3[%c0, %c0_1] : memref<8x16xf32, #tpu.memory_space<vmem>>, vector<8x16xf32>
    %c0_2 = arith.constant 0 : index
    %c0_3 = arith.constant 0 : index
    %4 = vector.load %arg10[%c0_2, %c0_3] : memref<16x32xf32, #tpu.memory_space<vmem>>, vector<16x32xf32>
    %cst = arith.constant dense<0.000000e+00> : vector<8x32xf32>
    %5 = tpu.matmul %3, %4, %cst {dimension_numbers = #tpu.dot_dimension_numbers<[1], [0], [0], [1], [0, 0, 1, 1], [], []>} : vector<8x16xf32>, vector<16x32xf32>, vector<8x32xf32> -> vector<8x32xf32>
    %c8_i32 = arith.constant 8 : i32
    %6 = arith.muli %arg1, %c8_i32 : i32
    %7 = tpu.assume_multiple %6, 8 : i32
    %c0_4 = arith.constant 0 : index
    %8 = arith.index_cast %7 : i32 to index
    %c0_5 = arith.constant 0 : index
    %9 = vector.load %arg2[%c0_4, %8, %c0_5] : memref<1x8x32xf32, #tpu.memory_space<vmem>>, vector<1x8x32xf32>
    %10 = vector.shape_cast %9 : vector<1x8x32xf32> to vector<8x32xf32>
    %c0_6 = arith.constant 0 : index
    %c0_7 = arith.constant 0 : index
    %11 = vector.load %arg5[%c0_6, %c0_7] : memref<5x32xf32, #tpu.memory_space<vmem>>, vector<1x32xf32>
    %c1 = arith.constant 1 : index
    %c0_8 = arith.constant 0 : index
    %12 = vector.load %arg5[%c1, %c0_8] : memref<5x32xf32, #tpu.memory_space<vmem>>, vector<1x32xf32>
    %c2 = arith.constant 2 : index
    %c0_9 = arith.constant 0 : index
    %13 = vector.load %arg5[%c2, %c0_9] : memref<5x32xf32, #tpu.memory_space<vmem>>, vector<1x32xf32>
    %c3 = arith.constant 3 : index
    %c0_10 = arith.constant 0 : index
    %14 = vector.load %arg5[%c3, %c0_10] : memref<5x32xf32, #tpu.memory_space<vmem>>, vector<1x32xf32>
    %c4 = arith.constant 4 : index
    %c0_11 = arith.constant 0 : index
    %15 = vector.load %arg5[%c4, %c0_11] : memref<5x32xf32, #tpu.memory_space<vmem>>, vector<1x32xf32>
    %16 = arith.addf %10, %5 : vector<8x32xf32>
    %cst_12 = arith.constant dense<0.000000e+00> : vector<8xf32>
    %17 = vector.multi_reduction <add>, %16, %cst_12 [1] : vector<8x32xf32> to vector<8xf32>
    %18 = vector.shape_cast %17 : vector<8xf32> to vector<8x1xf32>
    %cst_13 = arith.constant 3.200000e+01 : f32
    %19 = vector.broadcast %cst_13 : f32 to vector<8x1xf32>
    %20 = arith.divf %18, %19 : vector<8x1xf32>
    %21 = vector.broadcast %20 : vector<8x1xf32> to vector<8x32xf32>
    %22 = arith.subf %16, %21 : vector<8x32xf32>
    %23 = arith.mulf %22, %22 : vector<8x32xf32>
    %cst_14 = arith.constant dense<0.000000e+00> : vector<8xf32>
    %24 = vector.multi_reduction <add>, %23, %cst_14 [1] : vector<8x32xf32> to vector<8xf32>
    %25 = vector.shape_cast %24 : vector<8xf32> to vector<8x1xf32>
    %cst_15 = arith.constant 3.200000e+01 : f32
    %26 = vector.broadcast %cst_15 : f32 to vector<8x1xf32>
    %27 = arith.divf %25, %26 : vector<8x1xf32>
    %cst_16 = arith.constant 9.99999974E-6 : f32
    %28 = vector.broadcast %cst_16 : f32 to vector<8x1xf32>
    %29 = arith.addf %27, %28 : vector<8x1xf32>
    %30 = math.rsqrt %29 : vector<8x1xf32>
    %31 = vector.broadcast %30 : vector<8x1xf32> to vector<8x32xf32>
    %32 = arith.mulf %22, %31 : vector<8x32xf32>
    %33 = vector.broadcast %11 : vector<1x32xf32> to vector<8x32xf32>
    %34 = arith.mulf %32, %33 : vector<8x32xf32>
    %35 = vector.broadcast %12 : vector<1x32xf32> to vector<8x32xf32>
    %36 = arith.addf %34, %35 : vector<8x32xf32>
    %37 = arith.truncf %36 : vector<8x32xf32> to vector<8x32xbf16>
    %c0_17 = arith.constant 0 : index
    %c0_18 = arith.constant 0 : index
    %38 = vector.load %arg7[%c0_17, %c0_18] : memref<32x64xbf16, #tpu.memory_space<vmem>>, vector<32x64xbf16>
    %cst_19 = arith.constant dense<0.000000e+00> : vector<8x64xf32>
    %39 = tpu.matmul %37, %38, %cst_19 {dimension_numbers = #tpu.dot_dimension_numbers<[1], [0], [0], [1], [0, 0, 1, 1], [], []>} : vector<8x32xbf16>, vector<32x64xbf16>, vector<8x64xf32> -> vector<8x64xf32>
    %c0_20 = arith.constant 0 : index
    %c0_21 = arith.constant 0 : index
    %40 = vector.load %arg6[%c0_20, %c0_21] : memref<1x64xf32, #tpu.memory_space<vmem>>, vector<1x64xf32>
    %41 = vector.broadcast %40 : vector<1x64xf32> to vector<8x64xf32>
    %42 = arith.addf %39, %41 : vector<8x64xf32>
    %cst_22 = arith.constant 5.000000e-01 : f32
    %43 = vector.broadcast %cst_22 : f32 to vector<8x64xf32>
    %44 = arith.mulf %43, %42 : vector<8x64xf32>
    %cst_23 = arith.constant 0.707106769 : f32
    %45 = vector.broadcast %cst_23 : f32 to vector<8x64xf32>
    %46 = arith.mulf %42, %45 : vector<8x64xf32>
    %47 = math.erf %46 : vector<8x64xf32>
    %cst_24 = arith.constant 1.000000e+00 : f32
    %48 = vector.broadcast %cst_24 : f32 to vector<8x64xf32>
    %49 = arith.addf %48, %47 : vector<8x64xf32>
    %50 = arith.mulf %44, %49 : vector<8x64xf32>
    %51 = arith.truncf %50 : vector<8x64xf32> to vector<8x64xbf16>
    %c0_25 = arith.constant 0 : index
    %c0_26 = arith.constant 0 : index
    %52 = vector.load %arg8[%c0_25, %c0_26] : memref<64x32xbf16, #tpu.memory_space<vmem>>, vector<64x32xbf16>
    %cst_27 = arith.constant dense<0.000000e+00> : vector<8x32xf32>
    %53 = tpu.matmul %51, %52, %cst_27 {dimension_numbers = #tpu.dot_dimension_numbers<[1], [0], [0], [1], [0, 0, 1, 1], [], []>} : vector<8x64xbf16>, vector<64x32xbf16>, vector<8x32xf32> -> vector<8x32xf32>
    %54 = vector.broadcast %15 : vector<1x32xf32> to vector<8x32xf32>
    %55 = arith.addf %53, %54 : vector<8x32xf32>
    %56 = arith.addf %36, %55 : vector<8x32xf32>
    %cst_28 = arith.constant dense<0.000000e+00> : vector<8xf32>
    %57 = vector.multi_reduction <add>, %56, %cst_28 [1] : vector<8x32xf32> to vector<8xf32>
    %58 = vector.shape_cast %57 : vector<8xf32> to vector<8x1xf32>
    %cst_29 = arith.constant 3.200000e+01 : f32
    %59 = vector.broadcast %cst_29 : f32 to vector<8x1xf32>
    %60 = arith.divf %58, %59 : vector<8x1xf32>
    %61 = vector.broadcast %60 : vector<8x1xf32> to vector<8x32xf32>
    %62 = arith.subf %56, %61 : vector<8x32xf32>
    %63 = arith.mulf %62, %62 : vector<8x32xf32>
    %cst_30 = arith.constant dense<0.000000e+00> : vector<8xf32>
    %64 = vector.multi_reduction <add>, %63, %cst_30 [1] : vector<8x32xf32> to vector<8xf32>
    %65 = vector.shape_cast %64 : vector<8xf32> to vector<8x1xf32>
    %cst_31 = arith.constant 3.200000e+01 : f32
    %66 = vector.broadcast %cst_31 : f32 to vector<8x1xf32>
    %67 = arith.divf %65, %66 : vector<8x1xf32>
    %cst_32 = arith.constant 9.99999974E-6 : f32
    %68 = vector.broadcast %cst_32 : f32 to vector<8x1xf32>
    %69 = arith.addf %67, %68 : vector<8x1xf32>
    %70 = math.rsqrt %69 : vector<8x1xf32>
    %71 = vector.broadcast %70 : vector<8x1xf32> to vector<8x32xf32>
    %72 = arith.mulf %62, %71 : vector<8x32xf32>
    %73 = vector.broadcast %13 : vector<1x32xf32> to vector<8x32xf32>
    %74 = arith.mulf %72, %73 : vector<8x32xf32>
    %75 = vector.broadcast %14 : vector<1x32xf32> to vector<8x32xf32>
    %76 = arith.addf %74, %75 : vector<8x32xf32>
    %c0_33 = arith.constant 0 : index
    %c0_34 = arith.constant 0 : index
    %c0_35 = arith.constant 0 : index
    %77 = vector.load %arg9[%c0_33, %c0_34, %c0_35] : memref<1x8x32xf32, #tpu.memory_space<vmem>>, vector<1x8x32xf32>
    %78 = vector.shape_cast %77 : vector<1x8x32xf32> to vector<8x32xf32>
    %79 = vector.shape_cast %76 : vector<8x32xf32> to vector<1x8x32xf32>
    tpu.vector_store %arg9[%c0_33, %c0_34, %c0_35], %79 {strides = array<i32>} : memref<1x8x32xf32, #tpu.memory_space<vmem>>, vector<1x8x32xf32>,
    return
  }
  func.func @transform_0(%arg0: i32, %arg1: i32) -> (i32, i32, i32) {
    %c0_i32 = arith.constant 0 : i32
    %c0_i32_0 = arith.constant 0 : i32
    %c0_i32_1 = arith.constant 0 : i32
    return %arg0, %c0_i32, %c0_i32_0 : i32, i32, i32
  }
  func.func @transform_1(%arg0: i32, %arg1: i32) -> (i32, i32) {
    %c0_i32 = arith.constant 0 : i32
    %c0_i32_0 = arith.constant 0 : i32
    return %arg1, %c0_i32 : i32, i32
  }
  func.func @transform_2(%arg0: i32, %arg1: i32) -> (i32, i32) {
    %c0_i32 = arith.constant 0 : i32
    %c0_i32_0 = arith.constant 0 : i32
    %c0_i32_1 = arith.constant 0 : i32
    return %c0_i32, %c0_i32_0 : i32, i32
  }
  func.func @transform_3(%arg0: i32, %arg1: i32) -> (i32, i32) {
    %c0_i32 = arith.constant 0 : i32
    %c0_i32_0 = arith.constant 0 : i32
    %c0_i32_1 = arith.constant 0 : i32
    return %c0_i32, %c0_i32_0 : i32, i32
  }
  func.func @transform_4(%arg0: i32, %arg1: i32) -> (i32, i32) {
    %c0_i32 = arith.constant 0 : i32
    %c0_i32_0 = arith.constant 0 : i32
    %c0_i32_1 = arith.constant 0 : i32
    return %c0_i32, %c0_i32_0 : i32, i32
  }
  func.func @transform_5(%arg0: i32, %arg1: i32) -> (i32, i32) {
    %c0_i32 = arith.constant 0 : i32
    %c0_i32_0 = arith.constant 0 : i32
    %c0_i32_1 = arith.constant 0 : i32
    return %c0_i32, %c0_i32_0 : i32, i32
  }
  func.func @transform_6(%arg0: i32, %arg1: i32) -> (i32, i32) {
    %c0_i32 = arith.constant 0 : i32
    %c0_i32_0 = arith.constant 0 : i32
    %c0_i32_1 = arith.constant 0 : i32
    return %c0_i32, %c0_i32_0 : i32, i32
  }
  func.func @transform_7(%arg0: i32, %arg1: i32) -> (i32, i32, i32) {
    %c0_i32 = arith.constant 0 : i32
    %c0_i32_0 = arith.constant 0 : i32
    return %arg0, %arg1, %c0_i32 : i32, i32, i32
  }
}

module attributes {stable_mosaic.version = 11 : i64} {
  func.func @fnet_layer_kernel(%arg0: i32, %arg1: i32, %arg2: memref<1x8x32xf32, #tpu.memory_space<vmem>>, %arg3: memref<8x16xf32, #tpu.memory_space<vmem>>, %arg4: memref<32x64xf32, #tpu.memory_space<vmem>>, %arg5: memref<5x32xf32, #tpu.memory_space<vmem>>, %arg6: memref<1x64xf32, #tpu.memory_space<vmem>>, %arg7: memref<32x64xbf16, #tpu.memory_space<vmem>>, %arg8: memref<64x32xbf16, #tpu.memory_space<vmem>>, %arg9: memref<1x8x32xf32, #tpu.memory_space<vmem>>, %arg10: memref<16x32xf32, #tpu.memory_space<vmem>>) attributes {dimension_semantics = [#tpu.dimension_semantics<parallel>, #tpu.dimension_semantics<arbitrary>], iteration_bounds = array<i64: 2, 1>, scalar_prefetch = 0 : i64, scratch_operands = 1 : i64, tpu.core_type = #tpu.core_type<tc>, window_params = [{transform_indices = @transform_0, window_bounds = array<i64: 1, 8, 32>}, {transform_indices = @transform_1, window_bounds = array<i64: 8, 16>}, {pipeline_mode = #tpu.pipeline_mode<synchronous>, transform_indices = @transform_2, window_bounds = array<i64: 32, 64>}, {pipeline_mode = #tpu.pipeline_mode<synchronous>, transform_indices = @transform_3, window_bounds = array<i64: 5, 32>}, {pipeline_mode = #tpu.pipeline_mode<synchronous>, transform_indices = @transform_4, window_bounds = array<i64: 1, 64>}, {pipeline_mode = #tpu.pipeline_mode<synchronous>, transform_indices = @transform_5, window_bounds = array<i64: 32, 64>}, {pipeline_mode = #tpu.pipeline_mode<synchronous>, transform_indices = @transform_6, window_bounds = array<i64: 64, 32>}, {transform_indices = @transform_7, window_bounds = array<i64: 1, 8, 32>}]} {
    %c0_i32 = arith.constant 0 : i32
    %0 = arith.cmpi eq, %arg1, %c0_i32 : i32
    %1 = arith.extui %0 : i1 to i32
    %c0_i32_0 = arith.constant 0 : i32
    %2 = arith.cmpi ne, %1, %c0_i32_0 : i32
    scf.if %2 {
      %c0_36 = arith.constant 0 : index
      %c0_37 = arith.constant 0 : index
      %c0_38 = arith.constant 0 : index
      %80 = vector.load %arg2[%c0_36, %c0_37, %c0_38] : memref<1x8x32xf32, #tpu.memory_space<vmem>>, vector<1x8x32xf32>
      %81 = vector.shape_cast %80 : vector<1x8x32xf32> to vector<8x32xf32>
      %c0_39 = arith.constant 0 : index
      %c0_40 = arith.constant 0 : index
      %82 = vector.load %arg4[%c0_39, %c0_40] : memref<32x64xf32, #tpu.memory_space<vmem>>, vector<32x64xf32>
      %cst_41 = arith.constant dense<0.000000e+00> : vector<8x64xf32>
      %83 = tpu.matmul %81, %82, %cst_41 {dimension_numbers = #tpu.dot_dimension_numbers<[1], [0], [0], [1], [0, 0, 1, 1], [], []>} : vector<8x32xf32>, vector<32x64xf32>, vector<8x64xf32> -> vector<8x64xf32>
      %84 = vector.extract_strided_slice %83 {offsets = [0, 0], sizes = [8, 32], strides = [1, 1]} : vector<8x64xf32> to vector<8x32xf32>
      %c0_42 = arith.constant 0 : index
      %c0_43 = arith.constant 0 : index
      %85 = vector.load %arg10[%c0_42, %c0_43] : memref<16x32xf32, #tpu.memory_space<vmem>>, vector<8x32xf32>
      tpu.vector_store %arg10[%c0_42, %c0_43], %84 {strides = array<i32>} : memref<16x32xf32, #tpu.memory_space<vmem>>, vector<8x32xf32>,
      %86 = vector.extract_strided_slice %83 {offsets = [0, 32], sizes = [8, 32], strides = [1, 1]} : vector<8x64xf32> to vector<8x32xf32>
      %c8 = arith.constant 8 : index
      %c0_44 = arith.constant 0 : index
      %87 = vector.load %arg10[%c8, %c0_44] : memref<16x32xf32, #tpu.memory_space<vmem>>, vector<8x32xf32>
      tpu.vector_store %arg10[%c8, %c0_44], %86 {strides = array<i32>} : memref<16x32xf32, #tpu.memory_space<vmem>>, vector<8x32xf32>,
    } else {
    }
    %c0 = arith.constant 0 : index
    %c0_1 = arith.constant 0 : index
    %3 = vector.load %arg3[%c0, %c0_1] : memref<8x16xf32, #tpu.memory_space<vmem>>, vector<8x16xf32>
    %c0_2 = arith.constant 0 : index
    %c0_3 = arith.constant 0 : index
    %4 = vector.load %arg10[%c0_2, %c0_3] : memref<16x32xf32, #tpu.memory_space<vmem>>, vector<16x32xf32>
    %cst = arith.constant dense<0.000000e+00> : vector<8x32xf32>
    %5 = tpu.matmul %3, %4, %cst {dimension_numbers = #tpu.dot_dimension_numbers<[1], [0], [0], [1], [0, 0, 1, 1], [], []>} : vector<8x16xf32>, vector<16x32xf32>, vector<8x32xf32> -> vector<8x32xf32>
    %c8_i32 = arith.constant 8 : i32
    %6 = arith.muli %arg1, %c8_i32 : i32
    %7 = tpu.assume_multiple %6, 8 : i32
    %c0_4 = arith.constant 0 : index
    %8 = arith.index_cast %7 : i32 to index
    %c0_5 = arith.constant 0 : index
    %9 = vector.load %arg2[%c0_4, %8, %c0_5] : memref<1x8x32xf32, #tpu.memory_space<vmem>>, vector<1x8x32xf32>
    %10 = vector.shape_cast %9 : vector<1x8x32xf32> to vector<8x32xf32>
    %c0_6 = arith.constant 0 : index
    %c0_7 = arith.constant 0 : index
    %11 = vector.load %arg5[%c0_6, %c0_7] : memref<5x32xf32, #tpu.memory_space<vmem>>, vector<1x32xf32>
    %c1 = arith.constant 1 : index
    %c0_8 = arith.constant 0 : index
    %12 = vector.load %arg5[%c1, %c0_8] : memref<5x32xf32, #tpu.memory_space<vmem>>, vector<1x32xf32>
    %c2 = arith.constant 2 : index
    %c0_9 = arith.constant 0 : index
    %13 = vector.load %arg5[%c2, %c0_9] : memref<5x32xf32, #tpu.memory_space<vmem>>, vector<1x32xf32>
    %c3 = arith.constant 3 : index
    %c0_10 = arith.constant 0 : index
    %14 = vector.load %arg5[%c3, %c0_10] : memref<5x32xf32, #tpu.memory_space<vmem>>, vector<1x32xf32>
    %c4 = arith.constant 4 : index
    %c0_11 = arith.constant 0 : index
    %15 = vector.load %arg5[%c4, %c0_11] : memref<5x32xf32, #tpu.memory_space<vmem>>, vector<1x32xf32>
    %16 = arith.addf %10, %5 : vector<8x32xf32>
    %cst_12 = arith.constant dense<0.000000e+00> : vector<8xf32>
    %17 = vector.multi_reduction <add>, %16, %cst_12 [1] : vector<8x32xf32> to vector<8xf32>
    %18 = vector.shape_cast %17 : vector<8xf32> to vector<8x1xf32>
    %cst_13 = arith.constant 3.200000e+01 : f32
    %19 = vector.broadcast %cst_13 : f32 to vector<8x1xf32>
    %20 = arith.divf %18, %19 : vector<8x1xf32>
    %21 = vector.broadcast %20 : vector<8x1xf32> to vector<8x32xf32>
    %22 = arith.subf %16, %21 : vector<8x32xf32>
    %23 = arith.mulf %22, %22 : vector<8x32xf32>
    %cst_14 = arith.constant dense<0.000000e+00> : vector<8xf32>
    %24 = vector.multi_reduction <add>, %23, %cst_14 [1] : vector<8x32xf32> to vector<8xf32>
    %25 = vector.shape_cast %24 : vector<8xf32> to vector<8x1xf32>
    %cst_15 = arith.constant 3.200000e+01 : f32
    %26 = vector.broadcast %cst_15 : f32 to vector<8x1xf32>
    %27 = arith.divf %25, %26 : vector<8x1xf32>
    %cst_16 = arith.constant 9.99999974E-6 : f32
    %28 = vector.broadcast %cst_16 : f32 to vector<8x1xf32>
    %29 = arith.addf %27, %28 : vector<8x1xf32>
    %30 = math.rsqrt %29 : vector<8x1xf32>
    %31 = vector.broadcast %30 : vector<8x1xf32> to vector<8x32xf32>
    %32 = arith.mulf %22, %31 : vector<8x32xf32>
    %33 = vector.broadcast %11 : vector<1x32xf32> to vector<8x32xf32>
    %34 = arith.mulf %32, %33 : vector<8x32xf32>
    %35 = vector.broadcast %12 : vector<1x32xf32> to vector<8x32xf32>
    %36 = arith.addf %34, %35 : vector<8x32xf32>
    %37 = arith.truncf %36 : vector<8x32xf32> to vector<8x32xbf16>
    %c0_17 = arith.constant 0 : index
    %c0_18 = arith.constant 0 : index
    %38 = vector.load %arg7[%c0_17, %c0_18] : memref<32x64xbf16, #tpu.memory_space<vmem>>, vector<32x64xbf16>
    %cst_19 = arith.constant dense<0.000000e+00> : vector<8x64xf32>
    %39 = tpu.matmul %37, %38, %cst_19 {dimension_numbers = #tpu.dot_dimension_numbers<[1], [0], [0], [1], [0, 0, 1, 1], [], []>} : vector<8x32xbf16>, vector<32x64xbf16>, vector<8x64xf32> -> vector<8x64xf32>
    %c0_20 = arith.constant 0 : index
    %c0_21 = arith.constant 0 : index
    %40 = vector.load %arg6[%c0_20, %c0_21] : memref<1x64xf32, #tpu.memory_space<vmem>>, vector<1x64xf32>
    %41 = vector.broadcast %40 : vector<1x64xf32> to vector<8x64xf32>
    %42 = arith.addf %39, %41 : vector<8x64xf32>
    %cst_22 = arith.constant 5.000000e-01 : f32
    %43 = vector.broadcast %cst_22 : f32 to vector<8x64xf32>
    %44 = arith.mulf %43, %42 : vector<8x64xf32>
    %cst_23 = arith.constant 0.707106769 : f32
    %45 = vector.broadcast %cst_23 : f32 to vector<8x64xf32>
    %46 = arith.mulf %42, %45 : vector<8x64xf32>
    %47 = math.erf %46 : vector<8x64xf32>
    %cst_24 = arith.constant 1.000000e+00 : f32
    %48 = vector.broadcast %cst_24 : f32 to vector<8x64xf32>
    %49 = arith.addf %48, %47 : vector<8x64xf32>
    %50 = arith.mulf %44, %49 : vector<8x64xf32>
    %51 = arith.truncf %50 : vector<8x64xf32> to vector<8x64xbf16>
    %c0_25 = arith.constant 0 : index
    %c0_26 = arith.constant 0 : index
    %52 = vector.load %arg8[%c0_25, %c0_26] : memref<64x32xbf16, #tpu.memory_space<vmem>>, vector<64x32xbf16>
    %cst_27 = arith.constant dense<0.000000e+00> : vector<8x32xf32>
    %53 = tpu.matmul %51, %52, %cst_27 {dimension_numbers = #tpu.dot_dimension_numbers<[1], [0], [0], [1], [0, 0, 1, 1], [], []>} : vector<8x64xbf16>, vector<64x32xbf16>, vector<8x32xf32> -> vector<8x32xf32>
    %54 = vector.broadcast %15 : vector<1x32xf32> to vector<8x32xf32>
    %55 = arith.addf %53, %54 : vector<8x32xf32>
    %56 = arith.addf %36, %55 : vector<8x32xf32>
    %cst_28 = arith.constant dense<0.000000e+00> : vector<8xf32>
    %57 = vector.multi_reduction <add>, %56, %cst_28 [1] : vector<8x32xf32> to vector<8xf32>
    %58 = vector.shape_cast %57 : vector<8xf32> to vector<8x1xf32>
    %cst_29 = arith.constant 3.200000e+01 : f32
    %59 = vector.broadcast %cst_29 : f32 to vector<8x1xf32>
    %60 = arith.divf %58, %59 : vector<8x1xf32>
    %61 = vector.broadcast %60 : vector<8x1xf32> to vector<8x32xf32>
    %62 = arith.subf %56, %61 : vector<8x32xf32>
    %63 = arith.mulf %62, %62 : vector<8x32xf32>
    %cst_30 = arith.constant dense<0.000000e+00> : vector<8xf32>
    %64 = vector.multi_reduction <add>, %63, %cst_30 [1] : vector<8x32xf32> to vector<8xf32>
    %65 = vector.shape_cast %64 : vector<8xf32> to vector<8x1xf32>
    %cst_31 = arith.constant 3.200000e+01 : f32
    %66 = vector.broadcast %cst_31 : f32 to vector<8x1xf32>
    %67 = arith.divf %65, %66 : vector<8x1xf32>
    %cst_32 = arith.constant 9.99999974E-6 : f32
    %68 = vector.broadcast %cst_32 : f32 to vector<8x1xf32>
    %69 = arith.addf %67, %68 : vector<8x1xf32>
    %70 = math.rsqrt %69 : vector<8x1xf32>
    %71 = vector.broadcast %70 : vector<8x1xf32> to vector<8x32xf32>
    %72 = arith.mulf %62, %71 : vector<8x32xf32>
    %73 = vector.broadcast %13 : vector<1x32xf32> to vector<8x32xf32>
    %74 = arith.mulf %72, %73 : vector<8x32xf32>
    %75 = vector.broadcast %14 : vector<1x32xf32> to vector<8x32xf32>
    %76 = arith.addf %74, %75 : vector<8x32xf32>
    %c0_33 = arith.constant 0 : index
    %c0_34 = arith.constant 0 : index
    %c0_35 = arith.constant 0 : index
    %77 = vector.load %arg9[%c0_33, %c0_34, %c0_35] : memref<1x8x32xf32, #tpu.memory_space<vmem>>, vector<1x8x32xf32>
    %78 = vector.shape_cast %77 : vector<1x8x32xf32> to vector<8x32xf32>
    %79 = vector.shape_cast %76 : vector<8x32xf32> to vector<1x8x32xf32>
    tpu.vector_store %arg9[%c0_33, %c0_34, %c0_35], %79 {strides = array<i32>} : memref<1x8x32xf32, #tpu.memory_space<vmem>>, vector<1x8x32xf32>,
    return
  }
  func.func @transform_0(%arg0: i32, %arg1: i32) -> (i32, i32, i32) {
    %c0_i32 = arith.constant 0 : i32
    %c0_i32_0 = arith.constant 0 : i32
    %c0_i32_1 = arith.constant 0 : i32
    return %arg0, %c0_i32, %c0_i32_0 : i32, i32, i32
  }
  func.func @transform_1(%arg0: i32, %arg1: i32) -> (i32, i32) {
    %c0_i32 = arith.constant 0 : i32
    %c0_i32_0 = arith.constant 0 : i32
    return %arg1, %c0_i32 : i32, i32
  }
  func.func @transform_2(%arg0: i32, %arg1: i32) -> (i32, i32) {
    %c0_i32 = arith.constant 0 : i32
    %c0_i32_0 = arith.constant 0 : i32
    %c0_i32_1 = arith.constant 0 : i32
    return %c0_i32, %c0_i32_0 : i32, i32
  }
  func.func @transform_3(%arg0: i32, %arg1: i32) -> (i32, i32) {
    %c0_i32 = arith.constant 0 : i32
    %c0_i32_0 = arith.constant 0 : i32
    %c0_i32_1 = arith.constant 0 : i32
    return %c0_i32, %c0_i32_0 : i32, i32
  }
  func.func @transform_4(%arg0: i32, %arg1: i32) -> (i32, i32) {
    %c0_i32 = arith.constant 0 : i32
    %c0_i32_0 = arith.constant 0 : i32
    %c0_i32_1 = arith.constant 0 : i32
    return %c0_i32, %c0_i32_0 : i32, i32
  }
  func.func @transform_5(%arg0: i32, %arg1: i32) -> (i32, i32) {
    %c0_i32 = arith.constant 0 : i32
    %c0_i32_0 = arith.constant 0 : i32
    %c0_i32_1 = arith.constant 0 : i32
    return %c0_i32, %c0_i32_0 : i32, i32
  }
  func.func @transform_6(%arg0: i32, %arg1: i32) -> (i32, i32) {
    %c0_i32 = arith.constant 0 : i32
    %c0_i32_0 = arith.constant 0 : i32
    %c0_i32_1 = arith.constant 0 : i32
    return %c0_i32, %c0_i32_0 : i32, i32
  }
  func.func @transform_7(%arg0: i32, %arg1: i32) -> (i32, i32, i32) {
    %c0_i32 = arith.constant 0 : i32
    %c0_i32_0 = arith.constant 0 : i32
    return %arg0, %arg1, %c0_i32 : i32, i32, i32
  }
}

</mosaic_0001>

<bundles_post_ra>
// kernel: fnet_encoder.3
= control target key start
LH: loop header
LB: loop body
LE: loop exit
PB: predicated region body
PF: predicated region fallthrough
CT: control target
= control target key end

     0   :  { %12 = vsyncpa [#allocation4], 0  ;;  %s1257_s0 = inlined_call_operand.vmem [shape: f32[2,8,32], index: 0, kind: input, shape index: {}]   ;;  %s1258_s1 = inlined_call_operand.vmem [shape: f32[8,16], index: 1, kind: input, shape index: {}]   ;;  %s1259_s2 = inlined_call_operand.vmem [shape: f32[32,64], index: 2, kind: input, shape index: {}]   ;;  %s1260_s3 = inlined_call_operand.vmem [shape: f32[5,32], index: 3, kind: input, shape index: {}]   ;;  %s1261_s4 = inlined_call_operand.vmem [shape: f32[1,64], index: 4, kind: input, shape index: {}]   ;;  %s1262_s5 = inlined_call_operand.vmem [shape: bf16[32,64], index: 5, kind: input, shape index: {}]   ;;  %s1263_s6 = inlined_call_operand.vmem [shape: bf16[64,32], index: 6, kind: input, shape index: {}]   ;;  %s1264_s7 = inlined_call_operand.hbm [shape: f32[2,8,32], index: 7, kind: output, shape index: {}]  }
   0x1   :  { %14 = vsyncpa [#allocation4 + $0x1], 0  ;;  %s1071_s24 = smov 0   ;;  %s1073_s25 = smov 0  }
   0x2   :  { %s1075_s26 = smov 0   ;;  %s1077_s27 = smov 0  }
   0x3   :  { %s1079_s28 = smov 0   ;;  %s1081_s29 = smov 0  }
   0x4 LB: > { %s784_s30 = sadd.s32 4294967295, %s1024_s29   ;;  %s785_s8 = sadd.s32 4294967294, %s1024_s29   ;;  %s1024_s29 = sphi %s1081_s29, %s20_s29   ;;  %s1020_s28 = sphi %s1079_s28, %s1271_s28   ;;  %s1016_s27 = sphi %s1077_s27, %s1270_s27   ;;  %s1012_s26 = sphi %s1075_s26, %s1269_s26   ;;  %s1008_s25 = sphi %s1073_s25, %s1268_s25   ;;  %s1004_s24 = sphi %s1071_s24, %s1267_s24  }
   0x5   : > { %s32_s9 = sadd.s32 1, %s1020_s28  ;;  %s198_s10 = sadd.s32 1, %s1012_s26 }
   0x6   : > { %p34_p0 = scmp.ge.s32.totalorder %s32_s9, 2  ;;  %p208_p1 = scmp.ne.s32.totalorder %s1012_s26, %s1008_s25 }
   0x7   : > { %p209_p2 = scmp.eq.s32.totalorder %s784_s30, 1  ;;  %p214_p3 = scmp.ne.s32.totalorder %s1008_s25, %s1004_s24 }
   0x8   : > { %s1273_s9 = smov (%p34_p0, %s32_s9), 0  ;;  %p215_p5 = scmp.eq.s32.totalorder %s785_s8, 1 }
   0x9   : > { %p1111_p4 = por %p209_p2, %p208_p1  ;;  %s193_s12 = ssub.s32 %s1020_s28, %s1273_s9 }
   0xa   : > { %p789_p6 = scmp.ge.s32.totalorder %s1024_s29, 1  ;;  %p196_p7 = scmp.eq.s32.totalorder %s193_s12, 0 }
   0xb   : > { %p1118_p8 = por %p215_p5, %p214_p3  ;;  %p262_p9 = scmp.lt.s32.totalorder %s1024_s29, 3 }
   0xc   : > { %s1124_s14 = scalar_select %p196_p7, %s1012_s26, %s198_s10  }
   0xd   : > { %p263_p10 = pnand %p789_p6, %p262_p9 }
   0xe   : > { %v311_v0 = vld [vmem:[%s1259_s2] sm:$0xff] (!%p263_p10)  ;;  %v312_v1 = vld [vmem:[%s1259_s2 + $0x8] sm:$0xff] (!%p263_p10)  ;;  %v313_v2 = vld [vmem:[%s1259_s2 + $0x10] sm:$0xff] (!%p263_p10)  ;;  %v1026_v3 = vmov (!%p263_p10), 0.0|0.0   ;;  %vm1027_vm0 = vmmov (!%p263_p10), 0   ;;  %v1028_v6 = vmov (!%p263_p10), 0.0  }
   0xf   : > { %266 = sbr.rel (%p263_p10) target bundleno = 1672 (0x688), region = 48  ;;  %866 = vmatprep.subr.bf16.mxu1 (!%p263_p10), %v1026_v3  ;;  %v867_v4 = vpack.c.bf16 (!%p263_p10), %v312_v1, %v311_v0  ;;  %v314_v5 = vld [vmem:[%s1259_s2 + $0x18] sm:$0xff] (!%p263_p10)  ;;  %836 = vmatprep.mubr.msk.f32.mxu1 (!%p263_p10), %vm1027_vm0, %v1028_v6  ;;  %p297_p11 = scmp.lt.s32.totalorder (!%p263_p10), %s1016_s27, 1  ;;  %vm315_vm1 = vcmask (!%p263_p10), 261120   ;;  %v395_v15 = vld [vmem:[%s1258_s1] sm:$0xff] (!%p263_p10)  ;;  %vm398_vm2 = vcmask (!%p263_p10), 130048  }
  0x10   : > { %854 = vmatprep.subr.bf16.mxu0 (!%p263_p10), %v1028_v6  ;;  %862 = vmatprep.mubr.msk.bf16.mxu0 (!%p263_p10), %vm1027_vm0, %v1028_v6  ;;  %v870_v7 = vpack.c.bf16 (!%p263_p10), %v314_v5, %v313_v2  ;;  %s1029_s15 = smov (!%p263_p10), 96   ;;  %v934_v25 = vld [vmem:[%s1262_s5] sm:$0xff] (!%p263_p10)   ;;  %v935_v26 = vld [vmem:[%s1262_s5 + $0x8] sm:$0xff] (!%p263_p10)   ;;  %v938_v39 = vld [vmem:[%s1263_s6 + $0x10] sm:$0xff] (!%p263_p10)   ;;  %vm615_vm3 = vcmask (!%p263_p10), 523264   ;;  %s294_s8 = sand.u32 (!%p263_p10), 1, %s1008_s25  }
  0x11   : > { %868 = vmatpush3.bf16.msra.mxu1 (!%p263_p10), %v867_v4  ;;  %v794_v31 = vld [vmem:[%s1260_s3] ss:$0 sm:$0xff] (!%p263_p10)  ;;  %v795_v33 = vld [vmem:[%s1260_s3 + $0x1] ss:$0 sm:$0xff] (!%p263_p10)  ;;  %v937_v38 = vld [vmem:[%s1263_s6 + $0x8] sm:$0xff] (!%p263_p10)   ;;  %s790_s10 = sshll.u32 (!%p263_p10), %s294_s8, 3 }
  0x12   : > { %869 = vmatprep.subr.bf16.mxu1 (!%p263_p10), %v1026_v3  ;;  %v936_v37 = vld [vmem:[%s1263_s6] sm:$0xff] (!%p263_p10)   ;;  %v939_v40 = vld [vmem:[%s1263_s6 + $0x18] sm:$0xff] (!%p263_p10)   ;;  %s809_s18 = sshll.u32 (!%p263_p10), %s1016_s27, 7  ;;  %s296_s19 = scalar_lea.vmem (!%p263_p10), [#allocation3], %s790_s10 }
  0x13   : > { %855 = vmatpush3.bf16.msra.mxu0 (!%p263_p10), %v936_v37  ;;  %v796_v41 = vld [vmem:[%s1261_s4] ss:$0 sm:$0xff] (!%p263_p10)  ;;  %v800_v53 = vld [vmem:[%s1260_s3 + $0x4] ss:$0 sm:$0xff] (!%p263_p10)  ;;  %s699_s20 = sshll.u32 (!%p263_p10), %s296_s19, 4  ;;  %s1211_s20 = int_to_ptr.vmem [resolvable:$true] %s699_s20 }
  0x14   : > { %856 = vmatprep.subr.bf16.mxu0 (!%p263_p10), %v1028_v6 }
  0x15   : > { %871 = vmatpush3.bf16.msra.mxu1 (!%p263_p10), %v870_v7 }
  0x16   : > { %s298_s23 = scalar_select %p297_p11, %s1016_s27, 1  ;;  %872 = vmatprep.subr.bf16.mxu1 %v1026_v3 }
  0x17   : > { %857 = vmatpush3.bf16.msra.mxu0 %v937_v38  ;;  %s1030_s27 = smov [#allocation3]  }
  0x18   : > { %s791_s30 = sshll.u32 %s298_s23, 3  ;;  %858 = vmatprep.subr.bf16.mxu0 %v1028_v6  ;;  %s1209_s23 = scalar_lea.hbm %s1264_s7, %s809_s18 }
  0x19   : > { %s300_s12 = scalar_lea.vmem %s1257_s0, %s791_s30  ;;  %s685_s30 = scalar_lea.sflag [#allocation4], %s294_s8 }
  0x1a   : > { %v310_v8 = vld [vmem:[%s300_s12] sm:$0xff]  ;;  %s946_s12 = scalar_lea.vmem %s1211_s20, 128  ;;  %s950_s10 = sshll.u32 %s1030_s27, 4  ;;  %s951_s10 = int_to_ptr.vmem [resolvable:$false] %s950_s10 }
  0x1b   : > { %837 = vmatmul.mubr.msk.f32.vlgmr.msra.gmra.mrb[0].mxu1 %vm315_vm1, %v310_v8  ;;  %859 = vmatpush3.bf16.msra.mxu0 %v938_v39  ;;  %p947_p12 = scmp.ne.s32.totalorder %s1211_s20, %s946_s12  ;;  %p953_p1 = scmp.lt.s32.totalorder %s1211_s20, %s951_s10 }
  0x1c   : > { %843 = vmatprep.mubr.msk.f32.mxu1 %vm1027_vm0, %v1028_v6  ;;  %860 = vmatprep.subr.bf16.mxu0 %v1028_v6 }
  0x1d   : > { %p948_p13 = pnand %p947_p12, %p1111_p4 }
  0x1f   : > { %861 = vmatpush3.bf16.msra.mxu0 %v939_v40  ;;  %p949_p0 = pneg %p948_p13 }
  0xee   : > { %v385_v9 = vpop.f32.mrb[0].mxu1 }
  0xef   : > { %389 = vst.msk [vmem:[#allocation2] sm:$0xff] %vm315_vm1, %v385_v9  ;;  %391 = vrot.lane.b32.xlu0 %v385_v9, %s1029_s15  ;;  %v838_v10 = vpop.f32.mrb[1].mxu1  ;;  %s952_s15 = scalar_lea.vmem %s951_s10, 256 }
  0xf0   : > { %p954_p2 = scmp.lt.s32.totalorder %s952_s15, %s946_s12 }
  0xf2   : > { %p955_p3 = por %p954_p2, %p953_p1 }
  0xf4   : > { %p956_p5 = pnand %p955_p3, %p949_p0 }
  0xf6   : > { %v396_v12 = vld [vmem:[#allocation2] sm:$0xff] }
 0x161   : > { %v392_v11 = vpop.permute.xlu0 %391 }
 0x162   : > { %394 = vst.msk [vmem:[#allocation2 + $0x8] sm:$0xff] %vm315_vm1, %v392_v11 }
 0x169   : > { %v397_v13 = vld [vmem:[#allocation2 + $0x8] sm:$0xff] }
 0x16a   : > { %v873_v14 = vpack.c.bf16 %v397_v13, %v396_v12 }
 0x16c   : > { %874 = vmatpush3.bf16.msra.mxu1 %v873_v14 }
 0x16d   : > { %846 = vmatprep.subr.bf16.mxu1 %v1028_v6 }
 0x16f   : > { %844 = vmatmul.mubr.msk.f32.vlgmr.msra.gmra.mrb[2].mxu1 %vm398_vm2, %v395_v15 }
 0x170   : > { %850 = vmatprep.mubr.msk.bf16.mxu1 %vm1027_vm0, %v1028_v6  ;;  %847 = vmatpush3.bf16.msra.mxu1 %v934_v25 }
 0x171   : > { %848 = vmatprep.subr.bf16.mxu1 %v1028_v6  ;;  %v806_v6 = vld [vmem:[%s1260_s3 + $0x2] ss:$0 sm:$0xff] }
 0x174   : > { %849 = vmatpush3.bf16.msra.mxu1 %v935_v26 }
 0x242   : > { %v468_v16 = vpop.f32.mrb[2].mxu1 }
 0x243   : > { %v480_v17 = vadd.f32 %v468_v16, %v310_v8  ;;  %v845_v18 = vpop.f32.mrb[3].mxu1  ;;  %v807_v8 = vld [vmem:[%s1260_s3 + $0x3] ss:$0 sm:$0xff] }
 0x245   : > { %v482_v19 = vsel %vm315_vm1, %v480_v17, 0.0 }
 0x246   : > { %483 = vadd.xlane.f32.xlu0 %v482_v19 }
 0x2d3   : > { %v484_v20 = vpop.xlane.xlu0 %483 }
 0x2d4   : > { %v486_v21 = vmul.f32 0.03125, %v484_v20 }
 0x2d6   : > { %v487_v22 = vsub.f32 %v480_v17, %v486_v21 }
 0x2d8   : > { %v488_v23 = vmul.f32 %v487_v22, %v487_v22 }
 0x2da   : > { %v489_v24 = vsel %vm315_vm1, %v488_v23, 0.0 }
 0x2db   : > { %490 = vadd.xlane.f32.xlu1 %v489_v24 }
 0x368   : > { %v491_v27 = vpop.xlane.xlu1 %490 }
 0x369   : > { %v492_v28 = vmul.f32 0.03125, %v491_v27 }
 0x36b   : > { %v493_v29 = vadd.f32 1e-05, %v492_v28 }
 0x36d   : > { %940 = vrsqrt.f32 %v493_v29 }
 0x377   : > { %v941_v30 = vpop.eup %940 }
 0x378   : > { %v495_v32 = vmul.f32 %v941_v30, %v487_v22 }
 0x37a   : > { %v500_v34 = vmul.f32 %v794_v31, %v495_v32 }
 0x37c   : > { %v505_v35 = vadd.f32 %v795_v33, %v500_v34 }
 0x37e   : > { %v506_v36 = vpack.c.bf16 %v505_v35, %v505_v35 }
 0x380   : > { %851 = vmatmul.mubr.msk.bf16.vlgmr.msra.gmra.mrb[4].mxu1 %vm315_vm1, %v506_v36 }
 0x453   : > { %v567_v42 = vpop.f32.mrb[4].mxu1 }
 0x454   : > { %v568_v43 = vadd.f32 %v796_v41, %v567_v42  ;;  %v852_v44 = vpop.f32.mrb[5].mxu1 }
 0x455   : > { %v570_v45 = vpop.f32.mrb[6].mxu1 }
 0x456   : > { %v574_v46 = vmul.f32 0.70710677, %v568_v43  ;;  %v853_v47 = vpop.f32.mrb[7].mxu1  ;;  %v573_v49 = vmul.f32 0.5, %v568_v43 }
 0x458   : > { %942 = verf.f32 %v574_v46 }
 0x462   : > { %v943_v48 = vpop.eup %942 }
 0x463   : > { %v576_v50 = vadd.f32 1.0, %v943_v48 }
 0x465   : > { %v577_v51 = vmul.f32 %v576_v50, %v573_v49 }
 0x467   : > { %v578_v52 = vpack.c.bf16 %v577_v51, %v577_v51 }
 0x469   : > { %863 = vmatmul.mubr.msk.bf16.vlgmr.msra.gmra.mrb[0].mxu0 %vm615_vm3, %v578_v52 }
 0x53c   : > { %v653_v54 = vpop.f32.mrb[0].mxu0 }
 0x53d   : > { %v654_v55 = vadd.f32 %v800_v53, %v653_v54  ;;  %v864_v56 = vpop.f32.mrb[1].mxu0 }
 0x53e   : > { %v656_v57 = vpop.f32.mrb[2].mxu0 }
 0x53f   : > { %v865_v58 = vpop.f32.mrb[3].mxu0  ;;  %v659_v59 = vadd.f32 %v654_v55, %v505_v35 }
 0x541   : > { %v660_v60 = vsel %vm315_vm1, %v659_v59, 0.0 }
 0x542   : > { %661 = vadd.xlane.f32.xlu1 %v660_v60 }
 0x5cf   : > { %v662_v61 = vpop.xlane.xlu1 %661 }
 0x5d0   : > { %v663_v62 = vmul.f32 0.03125, %v662_v61 }
 0x5d2   : > { %v664_v63 = vsub.f32 %v659_v59, %v663_v62 }
 0x5d4   : > { %v665_v0 = vmul.f32 %v664_v63, %v664_v63 }
 0x5d6   : > { %v666_v1 = vsel %vm315_vm1, %v665_v0, 0.0 }
 0x5d7   : > { %667 = vadd.xlane.f32.xlu1 %v666_v1 }
 0x664   : > { %v668_v2 = vpop.xlane.xlu1 %667 }
 0x665   : > { %v669_v3 = vmul.f32 0.03125, %v668_v2 }
 0x667   : > { %v670_v4 = vadd.f32 1e-05, %v669_v3 }
 0x669   : > { %944 = vrsqrt.f32 %v670_v4 }
 0x673   : > { %v945_v5 = vpop.eup %944 }
 0x674   : > { %v672_v7 = vmul.f32 %v945_v5, %v664_v63 }
 0x676   : > { %v677_v9 = vmul.f32 %v806_v6, %v672_v7 }
 0x678   : > { %v682_v10 = vadd.f32 %v807_v8, %v677_v9 }
 0x67a   : > { %683 = vst.msk [vmem:[%s296_s19] sm:$0xff] %vm315_vm1, %v682_v10 }
 0x67b   : > { %959 = shalt.err (!%p956_p5)
}
 0x67c   : > { %s960_s8 = scalar_lea.hbm %s1209_s23, 128  ;;  %s964_s18 = scalar_lea.hbm %s1264_s7, 256 }
 0x67d   : > { %p961_p6 = scmp.ne.s32.totalorder %s1209_s23, %s960_s8  ;;  %p965_p10 = scmp.lt.u32.totalorder %s1209_s23, %s1264_s7 }
 0x67e   : > { %p966_p11 = scmp.lt.u32.totalorder %s964_s18, %s960_s8  ;;  %p968_p13 = scmp.lt.u32.totalorder %s960_s8, %s1209_s23 }
 0x67f   : > { %p962_p7 = pnand %p961_p6, %p1111_p4 }
 0x680   : > { %p967_p12 = por %p966_p11, %p965_p10 }
 0x681   : > { %p963_p9 = pneg %p962_p7 }
 0x682   : > { %p969_p0 = por %p968_p13, %p967_p12 }
 0x684   : > { %p970_p1 = pnand %p969_p0, %p963_p9 }
 0x686   : > { %973 = shalt.err (!%p970_p1)
}
 0x687   : > { %875 = dma.vmem_to_hbm [thread:$0]  (%p1111_p4), %s1211_s20, 128, %s1209_s23, %s685_s30  }
 0x688 PF: > { %p881_p2 = scmp.ge.s32.totalorder %s1024_s29, 2  ;;  %s711_s22 = sand.u32 1, %s1004_s24  }
 0x689   : > { %s712_s12 = scalar_lea.sflag [#allocation4], %s711_s22 }
 0x68a   : > { %p878_p3 = pnand %p881_p2, %p1118_p8 }
 0x68c   : > { %999 = dma.done.wait (!%p878_p3), %s712_s12, 128  }
 0x68d   : > { %1001 = vsyncadd (!%p878_p3), %s712_s12, 4294967168  ;;  %s20_s29 = sadd.s32 1, %s1024_s29   ;;  %s1267_s24 = smov %s1008_s25 }
 0x68e   : > { %p17_p5 = scmp.ge.s32.totalorder %s20_s29, 4   ;;  %s1268_s25 = smov %s1012_s26 }
 0x68f   : > { %s1269_s26 = smov %s1124_s14  ;;  %s1270_s27 = smov %s1020_s28 }
 0x690   : > { %s1271_s28 = smov %s1273_s9  ;;  %19 = sbr.rel (!%p17_p5) target bundleno = 4 (0x4), region = 91 }
 0x697   :  { %717 = vsyncpa [#allocation4], 1 }
 0x698   :  { %719 = vsyncpa [#allocation4 + $0x1], 1 }

// kernel: fnet_encoder.2
= control target key start
LH: loop header
LB: loop body
LE: loop exit
PB: predicated region body
PF: predicated region fallthrough
CT: control target
= control target key end

     0   :  { %s976_s24 = smov 0   ;;  %s978_s25 = smov 0   ;;  %s1090_s0 = inlined_call_operand.vmem [shape: f32[2,8,32], index: 0, kind: input, shape index: {}]   ;;  %s1091_s1 = inlined_call_operand.vmem [shape: f32[8,16], index: 1, kind: input, shape index: {}]   ;;  %s1092_s2 = inlined_call_operand.vmem [shape: f32[32,64], index: 2, kind: input, shape index: {}]   ;;  %s1093_s3 = inlined_call_operand.vmem [shape: f32[5,32], index: 3, kind: input, shape index: {}]   ;;  %s1094_s4 = inlined_call_operand.vmem [shape: f32[1,64], index: 4, kind: input, shape index: {}]   ;;  %s1095_s5 = inlined_call_operand.vmem [shape: bf16[32,64], index: 5, kind: input, shape index: {}]   ;;  %s1096_s6 = inlined_call_operand.vmem [shape: bf16[64,32], index: 6, kind: input, shape index: {}]   ;;  %s1097_s7 = inlined_call_operand.vmem [shape: f32[2,8,32], index: 7, kind: output, shape index: {}]  }
   0x1   :  { %s980_s26 = smov 0  }
   0x2 LB: > { %s29_s27 = sadd.s32 1, %s926_s25  ;;  %p784_p0 = scmp.ge.s32.totalorder %s930_s26, 1  ;;  %s930_s26 = sphi %s980_s26, %s17_s26   ;;  %s926_s25 = sphi %s978_s25, %s1099_s25   ;;  %s922_s24 = sphi %s976_s24, %s1098_s24  }
   0x3   : > { %p31_p1 = scmp.ge.s32.totalorder %s29_s27, 2  ;;  %p259_p2 = scmp.lt.s32.totalorder %s930_s26, 3 }
   0x5   : > { %s1101_s27 = smov (%p31_p1, %s29_s27), 0  ;;  %p260_p3 = pnand %p784_p0, %p259_p2 }
   0x6   : > { %v317_v0 = vld [vmem:[%s1092_s2] sm:$0xff] (!%p260_p3)  ;;  %v318_v1 = vld [vmem:[%s1092_s2 + $0x8] sm:$0xff] (!%p260_p3)  ;;  %v319_v2 = vld [vmem:[%s1092_s2 + $0x10] sm:$0xff] (!%p260_p3)  ;;  %v932_v3 = vmov (!%p260_p3), 0.0|0.0   ;;  %vm933_vm0 = vmmov (!%p260_p3), 0   ;;  %v934_v6 = vmov (!%p260_p3), 0.0  }
   0x7   : > { %263 = sbr.rel (%p260_p3) target bundleno = 1650 (0x672), region = 48  ;;  %859 = vmatprep.subr.bf16.mxu1 (!%p260_p3), %v932_v3  ;;  %v860_v4 = vpack.c.bf16 (!%p260_p3), %v318_v1, %v317_v0  ;;  %v320_v5 = vld [vmem:[%s1092_s2 + $0x18] sm:$0xff] (!%p260_p3)  ;;  %829 = vmatprep.mubr.msk.f32.mxu1 (!%p260_p3), %vm933_vm0, %v934_v6  ;;  %p296_p4 = scmp.lt.s32.totalorder (!%p260_p3), %s922_s24, 1  ;;  %vm321_vm1 = vcmask (!%p260_p3), 261120   ;;  %v401_v15 = vld [vmem:[%s1091_s1] sm:$0xff] (!%p260_p3)  ;;  %vm404_vm2 = vcmask (!%p260_p3), 130048  }
   0x8   : > { %847 = vmatprep.subr.bf16.mxu0 (!%p260_p3), %v934_v6  ;;  %855 = vmatprep.mubr.msk.bf16.mxu0 (!%p260_p3), %vm933_vm0, %v934_v6  ;;  %v863_v7 = vpack.c.bf16 (!%p260_p3), %v320_v5, %v319_v2  ;;  %s935_s17 = smov (!%p260_p3), 96   ;;  %v896_v25 = vld [vmem:[%s1095_s5] sm:$0xff] (!%p260_p3)   ;;  %v897_v26 = vld [vmem:[%s1095_s5 + $0x8] sm:$0xff] (!%p260_p3)   ;;  %v900_v39 = vld [vmem:[%s1096_s6 + $0x10] sm:$0xff] (!%p260_p3)   ;;  %vm621_vm3 = vcmask (!%p260_p3), 523264  }
   0x9   : > { %861 = vmatpush3.bf16.msra.mxu1 (!%p260_p3), %v860_v4  ;;  %v789_v31 = vld [vmem:[%s1093_s3] ss:$0 sm:$0xff] (!%p260_p3)  ;;  %v790_v33 = vld [vmem:[%s1093_s3 + $0x1] ss:$0 sm:$0xff] (!%p260_p3)  ;;  %v899_v38 = vld [vmem:[%s1096_s6 + $0x8] sm:$0xff] (!%p260_p3)  }
   0xa   : > { %862 = vmatprep.subr.bf16.mxu1 (!%p260_p3), %v932_v3  ;;  %v898_v37 = vld [vmem:[%s1096_s6] sm:$0xff] (!%p260_p3)   ;;  %v901_v40 = vld [vmem:[%s1096_s6 + $0x18] sm:$0xff] (!%p260_p3)  }
   0xb   : > { %848 = vmatpush3.bf16.msra.mxu0 (!%p260_p3), %v898_v37  ;;  %v791_v41 = vld [vmem:[%s1094_s4] ss:$0 sm:$0xff] (!%p260_p3)  ;;  %v795_v53 = vld [vmem:[%s1093_s3 + $0x4] ss:$0 sm:$0xff] (!%p260_p3) }
   0xc   : > { %849 = vmatprep.subr.bf16.mxu0 (!%p260_p3), %v934_v6 }
   0xd   : > { %864 = vmatpush3.bf16.msra.mxu1 (!%p260_p3), %v863_v7 }
   0xe   : > { %s1103_s24 = smov (!%p296_p4, %s922_s24), 1  ;;  %865 = vmatprep.subr.bf16.mxu1 %v932_v3 }
   0xf   : > { %s785_s13 = sshll.u32 %s1103_s24, 3  ;;  %850 = vmatpush3.bf16.msra.mxu0 %v899_v38 }
  0x10   : > { %s299_s16 = scalar_lea.vmem %s1090_s0, %s785_s13  ;;  %851 = vmatprep.subr.bf16.mxu0 %v934_v6  ;;  %s310_s9 = scalar_lea.vmem %s1097_s7, %s785_s13 }
  0x11   : > { %v316_v8 = vld [vmem:[%s299_s16] sm:$0xff] }
  0x12   : > { %830 = vmatmul.mubr.msk.f32.vlgmr.msra.gmra.mrb[0].mxu1 %vm321_vm1, %v316_v8 }
  0x13   : > { %836 = vmatprep.mubr.msk.f32.mxu1 %vm933_vm0, %v934_v6  ;;  %852 = vmatpush3.bf16.msra.mxu0 %v900_v39 }
  0x14   : > { %853 = vmatprep.subr.bf16.mxu0 %v934_v6 }
  0x17   : > { %854 = vmatpush3.bf16.msra.mxu0 %v901_v40 }
  0xe5   : > { %v391_v9 = vpop.f32.mrb[0].mxu1 }
  0xe6   : > { %395 = vst.msk [vmem:[#allocation2] sm:$0xff] %vm321_vm1, %v391_v9  ;;  %397 = vrot.lane.b32.xlu0 %v391_v9, %s935_s17  ;;  %v831_v10 = vpop.f32.mrb[1].mxu1 }
  0xed   : > { %v402_v12 = vld [vmem:[#allocation2] sm:$0xff] }
 0x158   : > { %v398_v11 = vpop.permute.xlu0 %397 }
 0x159   : > { %400 = vst.msk [vmem:[#allocation2 + $0x8] sm:$0xff] %vm321_vm1, %v398_v11 }
 0x160   : > { %v403_v13 = vld [vmem:[#allocation2 + $0x8] sm:$0xff] }
 0x161   : > { %v866_v14 = vpack.c.bf16 %v403_v13, %v402_v12 }
 0x163   : > { %867 = vmatpush3.bf16.msra.mxu1 %v866_v14 }
 0x164   : > { %839 = vmatprep.subr.bf16.mxu1 %v934_v6 }
 0x166   : > { %837 = vmatmul.mubr.msk.f32.vlgmr.msra.gmra.mrb[2].mxu1 %vm404_vm2, %v401_v15 }
 0x167   : > { %843 = vmatprep.mubr.msk.bf16.mxu1 %vm933_vm0, %v934_v6  ;;  %840 = vmatpush3.bf16.msra.mxu1 %v896_v25 }
 0x168   : > { %841 = vmatprep.subr.bf16.mxu1 %v934_v6  ;;  %v801_v6 = vld [vmem:[%s1093_s3 + $0x2] ss:$0 sm:$0xff] }
 0x16b   : > { %842 = vmatpush3.bf16.msra.mxu1 %v897_v26 }
 0x239   : > { %v474_v16 = vpop.f32.mrb[2].mxu1 }
 0x23a   : > { %v486_v17 = vadd.f32 %v474_v16, %v316_v8  ;;  %v838_v18 = vpop.f32.mrb[3].mxu1  ;;  %v802_v8 = vld [vmem:[%s1093_s3 + $0x3] ss:$0 sm:$0xff] }
 0x23c   : > { %v488_v19 = vsel %vm321_vm1, %v486_v17, 0.0 }
 0x23d   : > { %489 = vadd.xlane.f32.xlu0 %v488_v19 }
 0x2ca   : > { %v490_v20 = vpop.xlane.xlu0 %489 }
 0x2cb   : > { %v492_v21 = vmul.f32 0.03125, %v490_v20 }
 0x2cd   : > { %v493_v22 = vsub.f32 %v486_v17, %v492_v21 }
 0x2cf   : > { %v494_v23 = vmul.f32 %v493_v22, %v493_v22 }
 0x2d1   : > { %v495_v24 = vsel %vm321_vm1, %v494_v23, 0.0 }
 0x2d2   : > { %496 = vadd.xlane.f32.xlu1 %v495_v24 }
 0x35f   : > { %v497_v27 = vpop.xlane.xlu1 %496 }
 0x360   : > { %v498_v28 = vmul.f32 0.03125, %v497_v27 }
 0x362   : > { %v499_v29 = vadd.f32 1e-05, %v498_v28 }
 0x364   : > { %902 = vrsqrt.f32 %v499_v29 }
 0x36e   : > { %v903_v30 = vpop.eup %902 }
 0x36f   : > { %v501_v32 = vmul.f32 %v903_v30, %v493_v22 }
 0x371   : > { %v506_v34 = vmul.f32 %v789_v31, %v501_v32 }
 0x373   : > { %v511_v35 = vadd.f32 %v790_v33, %v506_v34 }
 0x375   : > { %v512_v36 = vpack.c.bf16 %v511_v35, %v511_v35 }
 0x377   : > { %844 = vmatmul.mubr.msk.bf16.vlgmr.msra.gmra.mrb[4].mxu1 %vm321_vm1, %v512_v36 }
 0x44a   : > { %v573_v42 = vpop.f32.mrb[4].mxu1 }
 0x44b   : > { %v574_v43 = vadd.f32 %v791_v41, %v573_v42  ;;  %v845_v44 = vpop.f32.mrb[5].mxu1 }
 0x44c   : > { %v576_v45 = vpop.f32.mrb[6].mxu1 }
 0x44d   : > { %v580_v46 = vmul.f32 0.70710677, %v574_v43  ;;  %v846_v47 = vpop.f32.mrb[7].mxu1  ;;  %v579_v49 = vmul.f32 0.5, %v574_v43 }
 0x44f   : > { %904 = verf.f32 %v580_v46 }
 0x459   : > { %v905_v48 = vpop.eup %904 }
 0x45a   : > { %v582_v50 = vadd.f32 1.0, %v905_v48 }
 0x45c   : > { %v583_v51 = vmul.f32 %v582_v50, %v579_v49 }
 0x45e   : > { %v584_v52 = vpack.c.bf16 %v583_v51, %v583_v51 }
 0x460   : > { %856 = vmatmul.mubr.msk.bf16.vlgmr.msra.gmra.mrb[0].mxu0 %vm621_vm3, %v584_v52 }
 0x533   : > { %v659_v54 = vpop.f32.mrb[0].mxu0 }
 0x534   : > { %v660_v55 = vadd.f32 %v795_v53, %v659_v54  ;;  %v857_v56 = vpop.f32.mrb[1].mxu0 }
 0x535   : > { %v662_v57 = vpop.f32.mrb[2].mxu0 }
 0x536   : > { %v858_v58 = vpop.f32.mrb[3].mxu0  ;;  %v665_v59 = vadd.f32 %v660_v55, %v511_v35 }
 0x538   : > { %v666_v60 = vsel %vm321_vm1, %v665_v59, 0.0 }
 0x539   : > { %667 = vadd.xlane.f32.xlu1 %v666_v60 }
 0x5c6   : > { %v668_v61 = vpop.xlane.xlu1 %667 }
 0x5c7   : > { %v669_v62 = vmul.f32 0.03125, %v668_v61 }
 0x5c9   : > { %v670_v63 = vsub.f32 %v665_v59, %v669_v62 }
 0x5cb   : > { %v671_v0 = vmul.f32 %v670_v63, %v670_v63 }
 0x5cd   : > { %v672_v1 = vsel %vm321_vm1, %v671_v0, 0.0 }
 0x5ce   : > { %673 = vadd.xlane.f32.xlu1 %v672_v1 }
 0x65b   : > { %v674_v2 = vpop.xlane.xlu1 %673 }
 0x65c   : > { %v675_v3 = vmul.f32 0.03125, %v674_v2 }
 0x65e   : > { %v676_v4 = vadd.f32 1e-05, %v675_v3 }
 0x660   : > { %906 = vrsqrt.f32 %v676_v4 }
 0x66a   : > { %v907_v5 = vpop.eup %906 }
 0x66b   : > { %v678_v7 = vmul.f32 %v907_v5, %v670_v63 }
 0x66d   : > { %v683_v9 = vmul.f32 %v801_v6, %v678_v7 }
 0x66f   : > { %v688_v10 = vadd.f32 %v802_v8, %v683_v9 }
 0x671   : > { %689 = vst.msk [vmem:[%s310_s9] sm:$0xff] %vm321_vm1, %v688_v10 }
 0x672 PF: > { %s17_s26 = sadd.s32 1, %s930_s26   ;;  %s1098_s24 = smov %s926_s25 }
 0x673   : > { %p14_p5 = scmp.ge.s32.totalorder %s17_s26, 4   ;;  %s1099_s25 = smov %s1101_s27 }
 0x675   :  { %16 = sbr.rel (!%p14_p5) target bundleno = 2 (0x2), region = 86 }

</bundles_post_ra>
